<compile_context>
chip_gen: v6e
topology: v6e:2x2x1
jax: 0.10.0
libtpu: 0.0.40
codegen_flags: <defaults>
</compile_context>

<pallas_src>
import functools

import jax
import jax.numpy as jnp
from jax.experimental import pallas as pl
from jax.experimental.pallas import tpu as pltpu

LANES = 128


def _cdiv(a: int, b: int) -> int:
    return -(-a // b)


def _sublane_align(dtype) -> int:
    # Native TPU tiling: (8,128) for 4-byte, (16,128) for 2-byte, (32,128) for 1-byte.
    return {4: 8, 2: 16, 1: 32}.get(jnp.dtype(dtype).itemsize, 8)


def _chip_caps() -> dict:
    """Generation-aware tuning knobs (row-tile cap, #TensorCores, bf16 VALU)."""
    try:
        kind = jax.devices()[0].device_kind.lower()
    except Exception:
        kind = ""
    if "v7" in kind:      # 2 TensorCores, 64 MiB VMEM/TC, 3.2 TB/s HBM
        return dict(tr_max=8192, ncores=2, vmem_limit=48 << 20, bf16_math=True)
    if "v6" in kind:      # 1 TensorCore, 128 MiB VMEM
        return dict(tr_max=8192, ncores=1, vmem_limit=64 << 20, bf16_math=True)
    if "v5" in kind:      # v5e: 1 TC, 16 MiB default scoped VMEM, no bf16 VALU
        return dict(tr_max=4096, ncores=1, vmem_limit=32 << 20, bf16_math=False)
    return dict(tr_max=2048, ncores=1, vmem_limit=None, bf16_math=False)


def _split_aligned(x, neutral: float):
    """Flatten to (rows, 128) in the ORIGINAL dtype without a whole-tensor pad.

    The leading n_main = n - n % (align*128) elements are streamed through the
    kernel as a (rows, 128) slab; the < align*128 element tail is returned
    separately and reduced with plain jnp in the wrapper, so the kernel needs
    no per-element masking and no neutral-value pad copy of the whole tensor.

    Tensors smaller than one native tile are neutral-padded (relu(1 -/+ neutral)
    == 0) up to a single (align, 128) tile — a trivially small copy.
    """
    flat = x.reshape(-1)
    n = int(flat.shape[0])
    align = _sublane_align(x.dtype)
    unit = align * LANES
    n_main = (n // unit) * unit
    if n_main == 0:
        pad = jnp.full((unit - n,), neutral, dtype=x.dtype)
        main = jnp.concatenate([flat, pad])
        return main.reshape(align, LANES), None, n
    main = flat if n_main == n else flat[:n_main]
    tail = None if n_main == n else flat[n_main:]
    return main.reshape(n_main // LANES, LANES), tail, n


def _row_tiles(rows: int, tr_max: int):
    tr = min(tr_max, rows)            # rows and tr_max are multiples of `align`
    blocks = _cdiv(rows, tr)
    last_rows = rows - (blocks - 1) * tr
    return tr, blocks, last_rows


def _hinge_disc_kernel(real_ref, fake_ref, out_ref, acc_r, acc_f, *,
                       tr_real, tr_fake, blocks_real, blocks_fake,
                       last_rows_real, last_rows_fake,
                       tiles_per_core, total_tiles, bf16_math):
    p = pl.program_id(0)          # TensorCore ("parallel") axis
    j = pl.program_id(1)          # reduction ("arbitrary") axis

    @pl.when(j == 0)
    def _init():
        acc_r[...] = jnp.zeros_like(acc_r)
        acc_f[...] = jnp.zeros_like(acc_f)

    t = p * tiles_per_core + j    # global row-tile index

    def hinge_sum(ref, tr, is_real, valid_rows):
        x = ref[...]
        if bf16_math and x.dtype == jnp.bfloat16:
            # bf16 VALU path (v6e/v7x): elementwise hinge in bf16 (packed
            # 2/lane); upcast only for the accumulation reduce.
            pre = (1.0 - x) if is_real else (1.0 + x)          # stays bf16
            h = jnp.maximum(pre, 0.0).astype(jnp.float32)
        else:
            xf = x.astype(jnp.float32)
            pre = (1.0 - xf) if is_real else (1.0 + xf)
            h = jnp.maximum(pre, 0.0)
        if valid_rows is not None:                             # last block only
            row = jax.lax.broadcasted_iota(jnp.int32, (tr, LANES), 0)
            h = jnp.where(row < valid_rows, h, 0.0)
        # Group-wise VPU reduce into an (8,128) slab; no cross-lane XLU per step.
        return jnp.sum(h.reshape(tr // 8, 8, LANES), axis=0)

    def accumulate(ref, acc, tr, blocks, last_rows, is_real):
        full_last = (last_rows == tr)                          # static
        if full_last and blocks >= total_tiles:
            acc[...] += hinge_sum(ref, tr, is_real, None)
        elif full_last:
            @pl.when(t < blocks)
            def _():
                acc[...] += hinge_sum(ref, tr, is_real, None)
        else:
            @pl.when(t < blocks - 1)
            def _():
                acc[...] += hinge_sum(ref, tr, is_real, None)

            @pl.when(t == blocks - 1)
            def _():
                acc[...] += hinge_sum(ref, tr, is_real, last_rows)

    accumulate(real_ref, acc_r, tr_real, blocks_real, last_rows_real, True)
    accumulate(fake_ref, acc_f, tr_fake, blocks_fake, last_rows_fake, False)

    @pl.when(j == pl.num_programs(1) - 1)
    def _finalize():
        out_ref[0, 0] = jnp.sum(acc_r[...])
        out_ref[0, 1] = jnp.sum(acc_f[...])


def hinge_disc_loss(real, fake, *, weight: float = 1.0, start_step: int = 0,
                    global_step: int = -1, tr_max=None):
    """JAX/Pallas equivalent of HingeDiscLoss.forward.

    NOTE: the start_step / global_step gate is a Python-level (static) branch,
    exactly like the torch module's `if`; global_step must be a Python int.
    The gated path returns zeros((1,)) while the normal path returns a 0-d
    scalar — this shape asymmetry is inherited from the PyTorch module.
    """
    if start_step > 0 and global_step < start_step:
        return jnp.zeros((1,), dtype=jnp.float32)

    caps = _chip_caps()
    if tr_max is None:
        tr_max = caps["tr_max"]

    # Neutral values: relu(1 - (+1)) == 0 for real, relu(1 + (-1)) == 0 for fake
    # (only used for the tiny "smaller than one native tile" fallback).
    real2d, real_tail, n_real = _split_aligned(real, neutral=+1.0)
    fake2d, fake_tail, n_fake = _split_aligned(fake, neutral=-1.0)

    tr_real, blocks_real, last_rows_real = _row_tiles(real2d.shape[0], tr_max)
    tr_fake, blocks_fake, last_rows_fake = _row_tiles(fake2d.shape[0], tr_max)

    max_blocks = max(blocks_real, blocks_fake)
    ncores = max(1, min(caps["ncores"], max_blocks))
    tiles_per_core = _cdiv(max_blocks, ncores)
    total_tiles = ncores * tiles_per_core

    def clamped(last_block):
        # Clamp so the smaller tensor never indexes past its last block; the
        # corresponding out-of-range tiles are skipped with pl.when inside the
        # kernel (and the repeated block index means no extra DMA).
        def index_map(p, j):
            return (jnp.minimum(p * tiles_per_core + j, last_block), 0)
        return index_map

    kernel = functools.partial(
        _hinge_disc_kernel,
        tr_real=tr_real, tr_fake=tr_fake,
        blocks_real=blocks_real, blocks_fake=blocks_fake,
        last_rows_real=last_rows_real, last_rows_fake=last_rows_fake,
        tiles_per_core=tiles_per_core, total_tiles=total_tiles,
        bf16_math=caps["bf16_math"],
    )

    bytes_in = (real2d.size * jnp.dtype(real.dtype).itemsize
                + fake2d.size * jnp.dtype(fake.dtype).itemsize)

    compiler_kwargs = dict(dimension_semantics=("parallel", "arbitrary"))
    if caps["vmem_limit"] is not None:
        compiler_kwargs["vmem_limit_bytes"] = caps["vmem_limit"]

    sums = pl.pallas_call(
        kernel,
        out_shape=jax.ShapeDtypeStruct((ncores, 2), jnp.float32),
        grid_spec=pltpu.PrefetchScalarGridSpec(
            num_scalar_prefetch=0,
            grid=(ncores, tiles_per_core),
            in_specs=[
                pl.BlockSpec((tr_real, LANES), clamped(blocks_real - 1)),
                pl.BlockSpec((tr_fake, LANES), clamped(blocks_fake - 1)),
            ],
            out_specs=pl.BlockSpec((1, 2), lambda p, j: (p, 0),
                                   memory_space=pltpu.MemorySpace.SMEM),
            scratch_shapes=[
                pltpu.VMEM((8, LANES), jnp.float32),   # real partial sums
                pltpu.VMEM((8, LANES), jnp.float32),   # fake partial sums
            ],
        ),
        compiler_params=pltpu.CompilerParams(**compiler_kwargs),
        cost_estimate=pl.CostEstimate(
            flops=4 * (n_real + n_fake),
            transcendentals=0,
            bytes_accessed=int(bytes_in) + ncores * 8,
        ),
    )(real2d, fake2d)

    sum_real = jnp.sum(sums[:, 0])
    sum_fake = jnp.sum(sums[:, 1])
    # Sub-tile remainders (< align*128 elements) reduced outside the kernel.
    if real_tail is not None:
        sum_real = sum_real + jnp.sum(
            jnp.maximum(1.0 - real_tail.astype(jnp.float32), 0.0))
    if fake_tail is not None:
        sum_fake = sum_fake + jnp.sum(
            jnp.maximum(1.0 + fake_tail.astype(jnp.float32), 0.0))

    loss = sum_real / jnp.float32(n_real) + sum_fake / jnp.float32(n_fake)
    return loss * jnp.float32(0.5 * float(weight))


def _reference(real, fake, weight=1.0):
    lr = jnp.mean(jnp.maximum(1.0 - real.astype(jnp.float32), 0.0))
    lf = jnp.mean(jnp.maximum(1.0 + fake.astype(jnp.float32), 0.0))
    return (lr + lf) * 0.5 * weight


if __name__ == "__main__":
    key = jax.random.PRNGKey(0)
    k1, k2, k3, k4, k5, k6 = jax.random.split(key, 6)

    # 1) PatchGAN-style discriminator logits, NCHW, f32, tile-aligned size.
    real = jax.random.normal(k1, (2, 4, 16, 16), dtype=jnp.float32)
    fake = jax.random.normal(k2, (2, 4, 16, 16), dtype=jnp.float32)
    loss = jax.block_until_ready(
        hinge_disc_loss(real, fake, weight=1.0, start_step=0, global_step=10))
    ref = _reference(real, fake, 1.0)
    assert jnp.allclose(loss, ref, atol=1e-5, rtol=1e-5), (loss, ref)

    # 2) bf16, ragged, sub-tile sized tensors: exercises the tiny neutral-pad
    #    path, the in-kernel dtype handling and (on v6e/v7x) the bf16 VPU math.
    real_b = jax.random.normal(k3, (2, 3, 17, 19), dtype=jnp.bfloat16)
    fake_b = jax.random.normal(k4, (2, 1, 11, 13), dtype=jnp.bfloat16)
    loss_b = jax.block_until_ready(hinge_disc_loss(real_b, fake_b, weight=0.7))
    ref_b = _reference(real_b, fake_b, 0.7)
    assert jnp.allclose(loss_b, ref_b, atol=3e-3, rtol=3e-3), (loss_b, ref_b)

    # 3) Multi-block path: wrapper-side tails, masked (partial) last block and
    #    asymmetric block counts between real and fake (small tr_max override).
    real_m = jax.random.normal(k5, (1, 1, 80, 130), dtype=jnp.float32)
    fake_m = jax.random.normal(k6, (1, 1, 41, 128), dtype=jnp.float32)
    loss_m = jax.block_until_ready(
        hinge_disc_loss(real_m, fake_m, weight=1.3, tr_max=32))
    ref_m = _reference(real_m, fake_m, 1.3)
    assert jnp.allclose(loss_m, ref_m, atol=1e-5, rtol=1e-5), (loss_m, ref_m)

    # 4) start_step gate (returns zeros(1), matching the PyTorch module).
    gated = jax.block_until_ready(
        hinge_disc_loss(real, fake, weight=1.0, start_step=100, global_step=5))
    assert gated.shape == (1,) and float(gated[0]) == 0.0

    print("KERNEL_OK")
</pallas_src>

<mosaic_0001>
module attributes {stable_mosaic.version = 11 : i64} {
  func.func @_hinge_disc_kernel(%arg0: i32, %arg1: i32, %arg2: memref<16x128xf32, #tpu.memory_space<vmem>>, %arg3: memref<16x128xf32, #tpu.memory_space<vmem>>, %arg4: memref<1x2xf32, #tpu.memory_space<smem>>, %arg5: memref<8x128xf32, #tpu.memory_space<vmem>>, %arg6: memref<8x128xf32, #tpu.memory_space<vmem>>) attributes {dimension_semantics = [#tpu.dimension_semantics<parallel>, #tpu.dimension_semantics<arbitrary>], iteration_bounds = array<i64: 1, 1>, scalar_prefetch = 0 : i64, scratch_operands = 2 : i64, tpu.core_type = #tpu.core_type<tc>, window_params = [{transform_indices = @transform_0, window_bounds = array<i64: 16, 128>}, {transform_indices = @transform_1, window_bounds = array<i64: 16, 128>}, {transform_indices = @transform_2, window_bounds = array<i64: 1, 2>}]} {
    %c0_i32 = arith.constant 0 : i32
    %0 = arith.cmpi eq, %arg1, %c0_i32 : i32
    %1 = arith.extui %0 : i1 to i32
    %c0_i32_0 = arith.constant 0 : i32
    %2 = arith.cmpi ne, %1, %c0_i32_0 : i32
    scf.if %2 {
      %cst_19 = arith.constant 0.000000e+00 : f32
      %26 = vector.broadcast %cst_19 : f32 to vector<8x128xf32>
      %c0_20 = arith.constant 0 : index
      %c0_21 = arith.constant 0 : index
      %27 = vector.load %arg5[%c0_20, %c0_21] : memref<8x128xf32, #tpu.memory_space<vmem>>, vector<8x128xf32>
      tpu.vector_store %arg5[%c0_20, %c0_21], %26 {strides = array<i32>} : memref<8x128xf32, #tpu.memory_space<vmem>>, vector<8x128xf32>,
      %cst_22 = arith.constant 0.000000e+00 : f32
      %28 = vector.broadcast %cst_22 : f32 to vector<8x128xf32>
      %c0_23 = arith.constant 0 : index
      %c0_24 = arith.constant 0 : index
      %29 = vector.load %arg6[%c0_23, %c0_24] : memref<8x128xf32, #tpu.memory_space<vmem>>, vector<8x128xf32>
      tpu.vector_store %arg6[%c0_23, %c0_24], %28 {strides = array<i32>} : memref<8x128xf32, #tpu.memory_space<vmem>>, vector<8x128xf32>,
    } else {
    }
    %c0 = arith.constant 0 : index
    %c0_1 = arith.constant 0 : index
    %3 = vector.load %arg5[%c0, %c0_1] : memref<8x128xf32, #tpu.memory_space<vmem>>, vector<8x128xf32>
    %c0_2 = arith.constant 0 : index
    %c0_3 = arith.constant 0 : index
    %4 = vector.load %arg2[%c0_2, %c0_3] : memref<16x128xf32, #tpu.memory_space<vmem>>, vector<16x128xf32>
    %cst = arith.constant 1.000000e+00 : f32
    %5 = vector.broadcast %cst : f32 to vector<16x128xf32>
    %6 = arith.subf %5, %4 : vector<16x128xf32>
    %cst_4 = arith.constant 0.000000e+00 : f32
    %7 = vector.broadcast %cst_4 : f32 to vector<16x128xf32>
    %8 = arith.maximumf %6, %7 : vector<16x128xf32>
    %9 = vector.shape_cast %8 : vector<16x128xf32> to vector<2x8x128xf32>
    %cst_5 = arith.constant dense<0.000000e+00> : vector<8x128xf32>
    %10 = vector.multi_reduction <add>, %9, %cst_5 [0] : vector<2x8x128xf32> to vector<8x128xf32>
    %11 = arith.addf %3, %10 : vector<8x128xf32>
    %c0_6 = arith.constant 0 : index
    %c0_7 = arith.constant 0 : index
    %12 = vector.load %arg5[%c0_6, %c0_7] : memref<8x128xf32, #tpu.memory_space<vmem>>, vector<8x128xf32>
    tpu.vector_store %arg5[%c0_6, %c0_7], %11 {strides = array<i32>} : memref<8x128xf32, #tpu.memory_space<vmem>>, vector<8x128xf32>,
    %c0_8 = arith.constant 0 : index
    %c0_9 = arith.constant 0 : index
    %13 = vector.load %arg6[%c0_8, %c0_9] : memref<8x128xf32, #tpu.memory_space<vmem>>, vector<8x128xf32>
    %c0_10 = arith.constant 0 : index
    %c0_11 = arith.constant 0 : index
    %14 = vector.load %arg3[%c0_10, %c0_11] : memref<16x128xf32, #tpu.memory_space<vmem>>, vector<16x128xf32>
    %cst_12 = arith.constant 1.000000e+00 : f32
    %15 = vector.broadcast %cst_12 : f32 to vector<16x128xf32>
    %16 = arith.addf %15, %14 : vector<16x128xf32>
    %cst_13 = arith.constant 0.000000e+00 : f32
    %17 = vector.broadcast %cst_13 : f32 to vector<16x128xf32>
    %18 = arith.maximumf %16, %17 : vector<16x128xf32>
    %19 = vector.shape_cast %18 : vector<16x128xf32> to vector<2x8x128xf32>
    %cst_14 = arith.constant dense<0.000000e+00> : vector<8x128xf32>
    %20 = vector.multi_reduction <add>, %19, %cst_14 [0] : vector<2x8x128xf32> to vector<8x128xf32>
    %21 = arith.addf %13, %20 : vector<8x128xf32>
    %c0_15 = arith.constant 0 : index
    %c0_16 = arith.constant 0 : index
    %22 = vector.load %arg6[%c0_15, %c0_16] : memref<8x128xf32, #tpu.memory_space<vmem>>, vector<8x128xf32>
    tpu.vector_store %arg6[%c0_15, %c0_16], %21 {strides = array<i32>} : memref<8x128xf32, #tpu.memory_space<vmem>>, vector<8x128xf32>,
    %c0_i32_17 = arith.constant 0 : i32
    %23 = arith.cmpi eq, %arg1, %c0_i32_17 : i32
    %24 = arith.extui %23 : i1 to i32
    %c0_i32_18 = arith.constant 0 : i32
    %25 = arith.cmpi ne, %24, %c0_i32_18 : i32
    scf.if %25 {
      %c0_19 = arith.constant 0 : index
      %c0_20 = arith.constant 0 : index
      %26 = vector.load %arg5[%c0_19, %c0_20] : memref<8x128xf32, #tpu.memory_space<vmem>>, vector<8x128xf32>
      %27 = vector.shape_cast %26 : vector<8x128xf32> to vector<1x8x128xf32>
      %cst_21 = arith.constant dense<0.000000e+00> : vector<1xf32>
      %28 = vector.multi_reduction <add>, %27, %cst_21 [1, 2] : vector<1x8x128xf32> to vector<1xf32>
      %29 = vector.shape_cast %28 : vector<1xf32> to vector<1x1x1xf32>
      %30 = vector.extract %29[0, 0, 0] : f32 from vector<1x1x1xf32>
      %c0_22 = arith.constant 0 : index
      %c0_23 = arith.constant 0 : index
      %31 = memref.load %arg4[%c0_22, %c0_23] : memref<1x2xf32, #tpu.memory_space<smem>>
      memref.store %30, %arg4[%c0_22, %c0_23] : memref<1x2xf32, #tpu.memory_space<smem>>
      %c0_24 = arith.constant 0 : index
      %c0_25 = arith.constant 0 : index
      %32 = vector.load %arg6[%c0_24, %c0_25] : memref<8x128xf32, #tpu.memory_space<vmem>>, vector<8x128xf32>
      %33 = vector.shape_cast %32 : vector<8x128xf32> to vector<1x8x128xf32>
      %cst_26 = arith.constant dense<0.000000e+00> : vector<1xf32>
      %34 = vector.multi_reduction <add>, %33, %cst_26 [1, 2] : vector<1x8x128xf32> to vector<1xf32>
      %35 = vector.shape_cast %34 : vector<1xf32> to vector<1x1x1xf32>
      %36 = vector.extract %35[0, 0, 0] : f32 from vector<1x1x1xf32>
      %c0_27 = arith.constant 0 : index
      %c1 = arith.constant 1 : index
      %37 = memref.load %arg4[%c0_27, %c1] : memref<1x2xf32, #tpu.memory_space<smem>>
      memref.store %36, %arg4[%c0_27, %c1] : memref<1x2xf32, #tpu.memory_space<smem>>
    } else {
    }
    return
  }
  func.func @transform_0(%arg0: i32, %arg1: i32) -> (i32, i32) {
    %c1_i32 = arith.constant 1 : i32
    %0 = arith.muli %arg0, %c1_i32 : i32
    %1 = arith.addi %0, %arg1 : i32
    %c0_i32 = arith.constant 0 : i32
    %2 = arith.minsi %1, %c0_i32 : i32
    %c0_i32_0 = arith.constant 0 : i32
    %c0_i32_1 = arith.constant 0 : i32
    return %2, %c0_i32_0 : i32, i32
  }
  func.func @transform_1(%arg0: i32, %arg1: i32) -> (i32, i32) {
    %c1_i32 = arith.constant 1 : i32
    %0 = arith.muli %arg0, %c1_i32 : i32
    %1 = arith.addi %0, %arg1 : i32
    %c0_i32 = arith.constant 0 : i32
    %2 = arith.minsi %1, %c0_i32 : i32
    %c0_i32_0 = arith.constant 0 : i32
    %c0_i32_1 = arith.constant 0 : i32
    return %2, %c0_i32_0 : i32, i32
  }
  func.func @transform_2(%arg0: i32, %arg1: i32) -> (i32, i32) {
    %c0_i32 = arith.constant 0 : i32
    %c0_i32_0 = arith.constant 0 : i32
    return %arg0, %c0_i32 : i32, i32
  }
}

</mosaic_0001>

<bundles_post_ra>
// kernel: tpu_custom_call.1
= control target key start
LH: loop header
LB: loop body
LE: loop exit
PB: predicated region body
PF: predicated region fallthrough
CT: control target
= control target key end

     0   :  { %7 = vsyncpa [#allocation5], 0  ;;  %s224_s0 = inlined_call_operand.hbm [shape: f32[16,128], index: 0, kind: input, shape index: {}]   ;;  %s225_s1 = inlined_call_operand.hbm [shape: f32[16,128], index: 1, kind: input, shape index: {}]   ;;  %s226_s2 = inlined_call_operand.hbm [shape: f32[1,2], index: 2, kind: output, shape index: {}]  }
   0x1   :  { %8 = vsyncpa [#allocation8], 0 }
   0x2   :  { %9 = vsyncpa [#allocation6], 0  ;;  %s195_s9 = smov [#allocation4]  }
   0x3   :  { %s21_s10 = sshll.u32 %s195_s9, 4  ;;  %s22_s10 = int_to_ptr.vmem [resolvable:$true] %s21_s10 }
   0x4   :  { %s149_s11 = scalar_lea.vmem %s22_s10, 256  ;;  %p154_p1 = scmp.lt.s32.totalorder %s22_s10, %s22_s10 }
   0x5   :  { %p150_p0 = scmp.ne.s32.totalorder %s22_s10, %s149_s11  ;;  %p155_p2 = scmp.lt.s32.totalorder %s149_s11, %s149_s11 }
   0x7   :  { %p156_p3 = por %p155_p2, %p154_p1 }
   0x9   :  { %p157_p4 = pnand %p156_p3, %p150_p0 }
   0xb   :  { %160 = shalt.err (!%p157_p4)
}
   0xc   :  { %s196_s12 = smov 128   ;;  %s197_s13 = smov 8  }
   0xd   :  { %27 = dma.hbm_to_vmem [thread:$0]  %s224_s0, 256, %s22_s10, [#allocation5], %s196_s12, %s196_s12, %s197_s13  }
   0xe   :  { %s198_s16 = smov [#allocation7]  }
   0xf   :  { %s39_s17 = sshll.u32 %s198_s16, 4  ;;  %s40_s17 = int_to_ptr.vmem [resolvable:$true] %s39_s17 }
  0x10   :  { %s169_s18 = scalar_lea.vmem %s40_s17, 256  ;;  %p174_p6 = scmp.lt.s32.totalorder %s40_s17, %s40_s17 }
  0x11   :  { %p170_p5 = scmp.ne.s32.totalorder %s40_s17, %s169_s18  ;;  %p175_p7 = scmp.lt.s32.totalorder %s169_s18, %s169_s18 }
  0x13   :  { %p176_p8 = por %p175_p7, %p174_p6 }
  0x15   :  { %p177_p9 = pnand %p176_p8, %p170_p5 }
  0x17   :  { %180 = shalt.err (!%p177_p9)
}
  0x18   :  { %45 = dma.hbm_to_vmem [thread:$0]  %s225_s1, 256, %s40_s17, [#allocation8], %s196_s12, %s196_s12, %s197_s13  }
  0x19   :  { %189 = dma.done.wait [#allocation5], 256  }
  0x1a   :  { %190 = vsyncadd [#allocation5], 4294967040 }
  0x1b   :  { %191 = dma.done.wait [#allocation8], 256  }
  0x1c   :  { %192 = vsyncadd [#allocation8], 4294967040  ;;  %v67_v0 = vld [vmem:[#allocation4] sm:$0xff]  ;;  %v68_v1 = vld [vmem:[#allocation4 + $0x8] sm:$0xff]  ;;  %s199_s21 = smov [#allocation9]  }
  0x1d   :  { %v77_v2 = vld [vmem:[#allocation7] sm:$0xff]  ;;  %v69_v3 = vsub.f32 1.0, %v67_v0  ;;  %v70_v4 = vsub.f32 1.0, %v68_v1  ;;  %v78_v5 = vld [vmem:[#allocation7 + $0x8] sm:$0xff] }
  0x1e   :  { %v79_v6 = vadd.f32 1.0, %v77_v2  ;;  %v80_v7 = vadd.f32 1.0, %v78_v5 }
  0x1f   :  { %v71_v8 = vmax.f32 %v69_v3, 0.0  ;;  %v72_v9 = vmax.f32 %v70_v4, 0.0 }
  0x20   :  { %v81_v10 = vmax.f32 %v79_v6, 0.0  ;;  %v82_v11 = vmax.f32 %v80_v7, 0.0 }
  0x21   :  { %v73_v12 = vadd.f32 %v72_v9, %v71_v8 }
  0x22   :  { %v83_v13 = vadd.f32 %v82_v11, %v81_v10 }
  0x23   :  { %90 = vadd.xlane.f32.xlu0 %v73_v12 }
  0x27   :  { %102 = vadd.xlane.f32.xlu0 %v83_v13 }
  0xac   :  { %v91_v14 = vpop.xlane.xlu0 %90 }
  0xad   :  { %v92_v15 = vrot.slane %v91_v14, 4 }
  0xaf   :  { %v93_v16 = vadd.f32 %v92_v15, %v91_v14 }
  0xb0   :  { %v103_v17 = vpop.xlane.xlu0 %102 }
  0xb1   :  { %v94_v18 = vrot.slane %v93_v16, 2  ;;  %v104_v19 = vrot.slane %v103_v17, 4 }
  0xb3   :  { %v105_v20 = vadd.f32 %v104_v19, %v103_v17  ;;  %v95_v21 = vadd.f32 %v94_v18, %v93_v16 }
  0xb5   :  { %v106_v22 = vrot.slane %v105_v20, 2  ;;  %v96_v23 = vrot.slane %v95_v21, 1 }
  0xb7   :  { %v107_v24 = vadd.f32 %v106_v22, %v105_v20  ;;  %v97_v25 = vadd.f32 %v96_v23, %v95_v21 }
  0xb9   :  { %132 = vpush %v97_v25  ;;  %v108_v26 = vrot.slane %v107_v24, 1 }
  0xbb   :  { %v109_v27 = vadd.f32 %v108_v26, %v107_v24 }
  0xbd   :  { %134 = vpush %v109_v27 }
  0xea   :  { %s133_s0 = spop %132 }
  0xeb   :  { %100 = sst [smem:[#allocation9]] %s133_s0 }
  0xee   :  { %s135_s1 = spop %134 }
  0xef   :  { %112 = sst [smem:[#allocation9 + $0x1]] %s135_s1 }
  0xf0   :  { %120 = dma.smem_to_hbm %s199_s21, 16, %s226_s2, [#allocation6]  }
  0xf1   :  { %193 = dma.done.wait [#allocation6], 16  }
  0xf2   :  { %194 = vsyncadd [#allocation6], 4294967280 }
  0xf3   :  { %124 = sfence }
  0xf4   :  { %125 = vsyncpa [#allocation5], 1 }
  0xf5   :  { %126 = vsyncpa [#allocation8], 1 }
  0xf6   :  { %127 = vsyncpa [#allocation6], 1 }

</bundles_post_ra>
